<compile_context>
chip_gen: v5e
topology: v5e:2x2
jax: 0.10.0
libtpu: 0.0.40
codegen_flags: <defaults>
</compile_context>

<pallas_src>
import math

import jax
import jax.numpy as jnp
from jax import lax
from jax.experimental import pallas as pl
from jax.experimental.pallas import tpu as pltpu


def _pool_kernel(x_ref, a_ref, w_ref, b_ref, o_ref):
    # x_ref: (1, C, N)            one batch slice (T == 1 folded away)
    # a_ref: (1, S, N, N)         S adjacency supports for this batch
    # w_ref: (order*S+1, 1, C)    1x1-conv weight, split per concatenated block
    # b_ref: (1, 1) in SMEM       1x1-conv bias
    # o_ref: (1, C, K)            pooled output (K = num_nodes_eeg)
    f32 = jnp.float32
    C, N = x_ref.shape[1], x_ref.shape[2]
    S = a_ref.shape[1]
    nblk = w_ref.shape[0]
    order = (nblk - 1) // S
    K = o_ref.shape[2]

    x = x_ref[0].astype(f32)                       # (C, N)
    bias = b_ref[0, 0].astype(f32)

    def nconv(h, adj):
        # einsum('cv,wv->cw'): out[c, w] = sum_v h[c, v] * adj[w, v]   (A @ B^T)
        return lax.dot_general(h, adj, (((1,), (1,)), ((), ())),
                               preferred_element_type=f32)

    def score_contrib(h, blk):
        wk = w_ref[blk].astype(f32)                # (1, C)
        return jnp.dot(wk, h, preferred_element_type=f32)   # (1, N)

    # ---- gcn2 score layer (never materializes the 7*C channel concat) ----
    score = score_contrib(x, 0) + bias             # (1, N)
    blk = 1
    for i in range(S):                             # static unroll: S supports
        adj = a_ref[0, i].astype(f32)              # (N, N)
        h = x
        for k in range(1, order + 1):              # static unroll: `order` hops
            h = nconv(h, adj)
            if k > 1:
                h = jnp.maximum(h, 0.0)            # relu on hops >= 2 (gcn2)
            score = score + score_contrib(h, blk)
            blk += 1
    # TODO(synk): F.dropout on the score is training-only RNG; inference
    # semantics (identity) are implemented here.

    # ---- top-K nodes by score (== torch.topk: sorted desc, ties -> lower idx)
    im = lax.broadcasted_iota(jnp.int32, (N, N), 0)        # row index m
    iN = lax.broadcasted_iota(jnp.int32, (N, N), 1)        # col index n
    eye = (im == iN).astype(f32)                           # (N, N) identity
    # score_col[m, 0] = score[0, m]  (vector "transpose" via one tiny matmul)
    score_col = lax.dot_general(eye, score, (((1,), (1,)), ((), ())),
                                preferred_element_type=f32)            # (N, 1)
    beats = (score_col > score) | ((score_col == score) & (im < iN))   # (N, N)
    rank = jnp.sum(beats.astype(f32), axis=0, keepdims=True)           # (1, N)

    jrow = lax.broadcasted_iota(jnp.int32, (K, N), 0).astype(f32)      # (K, N)
    onehot = (rank == jrow).astype(f32)            # (K, N): row j picks rank-j node

    # ---- gather + tanh gating, expressed as lane-friendly matmuls ----
    g_x = lax.dot_general(x, onehot, (((1,), (1,)), ((), ())),
                          preferred_element_type=f32)                  # (C, K)
    g_s = lax.dot_general(score, onehot, (((1,), (1,)), ((), ())),
                          preferred_element_type=f32)                  # (1, K)
    o_ref[0] = (g_x * jnp.tanh(g_s)).astype(o_ref.dtype)


def pool_forward(x, support, mlp_weight, mlp_bias, num_nodes_eeg):
    """x: (B, C, N, T=1), support: (B, S, N, N), mlp_weight: ((order*S+1)*C,),
    mlp_bias: scalar. Returns (B, C, num_nodes_eeg, 1)."""
    B, C, N, T = x.shape
    S = support.shape[1]
    K = num_nodes_eeg
    assert T == 1, "torch reference's score.squeeze()/topk requires T == 1"
    assert K <= N
    nblk = mlp_weight.shape[0] // C
    assert nblk * C == mlp_weight.shape[0] and (nblk - 1) % S == 0

    # Free reshapes only (no transposes, no data movement of substance).
    x3 = x.reshape(B, C, N).astype(jnp.float32)
    w3 = mlp_weight.reshape(nblk, 1, C).astype(jnp.float32)
    b2 = jnp.asarray(mlp_bias, jnp.float32).reshape(1, 1)
    sup = support.astype(jnp.float32)

    out = pl.pallas_call(
        _pool_kernel,
        out_shape=jax.ShapeDtypeStruct((B, C, K), x.dtype),
        grid_spec=pl.GridSpec(
            grid=(B,),
            in_specs=[
                pl.BlockSpec((1, C, N), lambda i: (i, 0, 0)),
                pl.BlockSpec((1, S, N, N), lambda i: (i, 0, 0, 0)),
                pl.BlockSpec((nblk, 1, C), lambda i: (0, 0, 0)),
                pl.BlockSpec(memory_space=pltpu.MemorySpace.SMEM),
            ],
            out_specs=pl.BlockSpec((1, C, K), lambda i: (i, 0, 0)),
        ),
        compiler_params=pltpu.CompilerParams(
            dimension_semantics=("parallel",),
        ),
    )(x3, sup, w3, b2)

    return out.reshape(B, C, K, 1)


def _reference(x, support, w, b, num_nodes_eeg, order):
    """Pure-JAX mirror of the PyTorch pool.forward (eval mode, T == 1)."""
    B, C, N, T = x.shape
    S = support.shape[1]
    hp = lax.Precision.HIGHEST
    out = [x]
    for i in range(S):
        a = support[:, i]
        h = x
        for k in range(1, order + 1):
            h = jnp.einsum('bcvt,bwv->bcwt', h, a, precision=hp)
            if k > 1:
                h = jax.nn.relu(h)
            out.append(h)
    hcat = jnp.concatenate(out, axis=1)                      # (B, (order*S+1)*C, N, T)
    score = jnp.einsum('bknt,k->bnt', hcat, w, precision=hp) + b   # (B, N, T)
    sq = score[:, :, 0]                                      # == score.squeeze() for T==1
    _, perm = lax.top_k(sq, num_nodes_eeg)                   # (B, K), sorted desc
    xg = jnp.take_along_axis(x[:, :, :, 0], perm[:, None, :], axis=2)   # (B, C, K)
    sg = jnp.take_along_axis(sq, perm, axis=1)               # (B, K)
    return (xg * jnp.tanh(sg)[:, None, :])[..., None]        # (B, C, K, 1)


if __name__ == "__main__":
    key = jax.random.PRNGKey(0)
    kx, ks, kw, kb = jax.random.split(key, 4)

    B, C, N, T = 2, 32, 16, 1      # T must be 1 for torch's score.squeeze()/topk path
    S = 3                           # support_len
    ORDER = 2                       # gcn2 default
    K = 8                           # num_nodes_eeg

    x = jax.random.normal(kx, (B, C, N, T), dtype=jnp.float32)
    support = 0.3 * jax.random.normal(ks, (B, S, N, N), dtype=jnp.float32)

    c_cat = (ORDER * S + 1) * C
    bound = 1.0 / math.sqrt(c_cat)
    mlp_weight = jax.random.uniform(kw, (c_cat,), jnp.float32, -bound, bound)
    mlp_bias = jax.random.uniform(kb, (), jnp.float32, -bound, bound)

    out = pool_forward(x, support, mlp_weight, mlp_bias, num_nodes_eeg=K)
    out = jax.block_until_ready(out)

    ref = jax.block_until_ready(_reference(x, support, mlp_weight, mlp_bias, K, ORDER))
    assert out.shape == (B, C, K, T)
    max_err = float(jnp.max(jnp.abs(out - ref)))
    assert jnp.allclose(out, ref, atol=1e-3, rtol=1e-3), f"mismatch vs reference: {max_err}"

    print("KERNEL_OK")
</pallas_src>

<mosaic_0001>
module attributes {stable_mosaic.version = 11 : i64} {
  func.func @_pool_kernel(%arg0: i32, %arg1: memref<1x32x16xf32, #tpu.memory_space<vmem>>, %arg2: memref<1x3x16x16xf32, #tpu.memory_space<vmem>>, %arg3: memref<7x1x32xf32, #tpu.memory_space<vmem>>, %arg4: memref<1x1xf32, #tpu.memory_space<smem>>, %arg5: memref<1x32x8xf32, #tpu.memory_space<vmem>>) attributes {dimension_semantics = [#tpu.dimension_semantics<parallel>], iteration_bounds = array<i64: 2>, scalar_prefetch = 0 : i64, scratch_operands = 0 : i64, tpu.core_type = #tpu.core_type<tc>, window_params = [{transform_indices = @transform_0, window_bounds = array<i64: 1, 32, 16>}, {transform_indices = @transform_1, window_bounds = array<i64: 1, 3, 16, 16>}, {pipeline_mode = #tpu.pipeline_mode<synchronous>, transform_indices = @transform_2, window_bounds = array<i64: 7, 1, 32>}, {transform_indices = @transform_3, window_bounds = array<i64: 1, 1>}, {transform_indices = @transform_4, window_bounds = array<i64: 1, 32, 8>}]} {
    %c0 = arith.constant 0 : index
    %c0_0 = arith.constant 0 : index
    %c0_1 = arith.constant 0 : index
    %0 = vector.load %arg1[%c0, %c0_0, %c0_1] : memref<1x32x16xf32, #tpu.memory_space<vmem>>, vector<1x32x16xf32>
    %1 = vector.shape_cast %0 : vector<1x32x16xf32> to vector<32x16xf32>
    %c0_2 = arith.constant 0 : index
    %c0_3 = arith.constant 0 : index
    %2 = memref.load %arg4[%c0_2, %c0_3] : memref<1x1xf32, #tpu.memory_space<smem>>
    %c0_4 = arith.constant 0 : index
    %c0_5 = arith.constant 0 : index
    %c0_6 = arith.constant 0 : index
    %3 = vector.load %arg3[%c0_4, %c0_5, %c0_6] : memref<7x1x32xf32, #tpu.memory_space<vmem>>, vector<1x1x32xf32>
    %4 = vector.shape_cast %3 : vector<1x1x32xf32> to vector<1x32xf32>
    %cst = arith.constant dense<0.000000e+00> : vector<1x16xf32>
    %5 = tpu.matmul %4, %1, %cst {dimension_numbers = #tpu.dot_dimension_numbers<[1], [0], [0], [1], [0, 0, 1, 1], [], []>} : vector<1x32xf32>, vector<32x16xf32>, vector<1x16xf32> -> vector<1x16xf32>
    %6 = vector.broadcast %2 : f32 to vector<1x16xf32>
    %7 = arith.addf %5, %6 : vector<1x16xf32>
    %c0_7 = arith.constant 0 : index
    %c0_8 = arith.constant 0 : index
    %c0_9 = arith.constant 0 : index
    %c0_10 = arith.constant 0 : index
    %8 = vector.load %arg2[%c0_7, %c0_8, %c0_9, %c0_10] : memref<1x3x16x16xf32, #tpu.memory_space<vmem>>, vector<1x1x16x16xf32>
    %9 = vector.shape_cast %8 : vector<1x1x16x16xf32> to vector<16x16xf32>
    %cst_11 = arith.constant dense<0.000000e+00> : vector<32x16xf32>
    %10 = tpu.matmul %1, %9, %cst_11 {dimension_numbers = #tpu.dot_dimension_numbers<[1], [1], [0], [0], [0, 0, 1, 0], [], []>} : vector<32x16xf32>, vector<16x16xf32>, vector<32x16xf32> -> vector<32x16xf32>
    %c1 = arith.constant 1 : index
    %c0_12 = arith.constant 0 : index
    %c0_13 = arith.constant 0 : index
    %11 = vector.load %arg3[%c1, %c0_12, %c0_13] : memref<7x1x32xf32, #tpu.memory_space<vmem>>, vector<1x1x32xf32>
    %12 = vector.shape_cast %11 : vector<1x1x32xf32> to vector<1x32xf32>
    %cst_14 = arith.constant dense<0.000000e+00> : vector<1x16xf32>
    %13 = tpu.matmul %12, %10, %cst_14 {dimension_numbers = #tpu.dot_dimension_numbers<[1], [0], [0], [1], [0, 0, 1, 1], [], []>} : vector<1x32xf32>, vector<32x16xf32>, vector<1x16xf32> -> vector<1x16xf32>
    %14 = arith.addf %7, %13 : vector<1x16xf32>
    %cst_15 = arith.constant dense<0.000000e+00> : vector<32x16xf32>
    %15 = tpu.matmul %10, %9, %cst_15 {dimension_numbers = #tpu.dot_dimension_numbers<[1], [1], [0], [0], [0, 0, 1, 0], [], []>} : vector<32x16xf32>, vector<16x16xf32>, vector<32x16xf32> -> vector<32x16xf32>
    %cst_16 = arith.constant 0.000000e+00 : f32
    %16 = vector.broadcast %cst_16 : f32 to vector<32x16xf32>
    %17 = arith.maximumf %15, %16 : vector<32x16xf32>
    %c2 = arith.constant 2 : index
    %c0_17 = arith.constant 0 : index
    %c0_18 = arith.constant 0 : index
    %18 = vector.load %arg3[%c2, %c0_17, %c0_18] : memref<7x1x32xf32, #tpu.memory_space<vmem>>, vector<1x1x32xf32>
    %19 = vector.shape_cast %18 : vector<1x1x32xf32> to vector<1x32xf32>
    %cst_19 = arith.constant dense<0.000000e+00> : vector<1x16xf32>
    %20 = tpu.matmul %19, %17, %cst_19 {dimension_numbers = #tpu.dot_dimension_numbers<[1], [0], [0], [1], [0, 0, 1, 1], [], []>} : vector<1x32xf32>, vector<32x16xf32>, vector<1x16xf32> -> vector<1x16xf32>
    %21 = arith.addf %14, %20 : vector<1x16xf32>
    %c0_20 = arith.constant 0 : index
    %c1_21 = arith.constant 1 : index
    %c0_22 = arith.constant 0 : index
    %c0_23 = arith.constant 0 : index
    %22 = vector.load %arg2[%c0_20, %c1_21, %c0_22, %c0_23] : memref<1x3x16x16xf32, #tpu.memory_space<vmem>>, vector<1x1x16x16xf32>
    %23 = vector.shape_cast %22 : vector<1x1x16x16xf32> to vector<16x16xf32>
    %cst_24 = arith.constant dense<0.000000e+00> : vector<32x16xf32>
    %24 = tpu.matmul %1, %23, %cst_24 {dimension_numbers = #tpu.dot_dimension_numbers<[1], [1], [0], [0], [0, 0, 1, 0], [], []>} : vector<32x16xf32>, vector<16x16xf32>, vector<32x16xf32> -> vector<32x16xf32>
    %c3 = arith.constant 3 : index
    %c0_25 = arith.constant 0 : index
    %c0_26 = arith.constant 0 : index
    %25 = vector.load %arg3[%c3, %c0_25, %c0_26] : memref<7x1x32xf32, #tpu.memory_space<vmem>>, vector<1x1x32xf32>
    %26 = vector.shape_cast %25 : vector<1x1x32xf32> to vector<1x32xf32>
    %cst_27 = arith.constant dense<0.000000e+00> : vector<1x16xf32>
    %27 = tpu.matmul %26, %24, %cst_27 {dimension_numbers = #tpu.dot_dimension_numbers<[1], [0], [0], [1], [0, 0, 1, 1], [], []>} : vector<1x32xf32>, vector<32x16xf32>, vector<1x16xf32> -> vector<1x16xf32>
    %28 = arith.addf %21, %27 : vector<1x16xf32>
    %cst_28 = arith.constant dense<0.000000e+00> : vector<32x16xf32>
    %29 = tpu.matmul %24, %23, %cst_28 {dimension_numbers = #tpu.dot_dimension_numbers<[1], [1], [0], [0], [0, 0, 1, 0], [], []>} : vector<32x16xf32>, vector<16x16xf32>, vector<32x16xf32> -> vector<32x16xf32>
    %cst_29 = arith.constant 0.000000e+00 : f32
    %30 = vector.broadcast %cst_29 : f32 to vector<32x16xf32>
    %31 = arith.maximumf %29, %30 : vector<32x16xf32>
    %c4 = arith.constant 4 : index
    %c0_30 = arith.constant 0 : index
    %c0_31 = arith.constant 0 : index
    %32 = vector.load %arg3[%c4, %c0_30, %c0_31] : memref<7x1x32xf32, #tpu.memory_space<vmem>>, vector<1x1x32xf32>
    %33 = vector.shape_cast %32 : vector<1x1x32xf32> to vector<1x32xf32>
    %cst_32 = arith.constant dense<0.000000e+00> : vector<1x16xf32>
    %34 = tpu.matmul %33, %31, %cst_32 {dimension_numbers = #tpu.dot_dimension_numbers<[1], [0], [0], [1], [0, 0, 1, 1], [], []>} : vector<1x32xf32>, vector<32x16xf32>, vector<1x16xf32> -> vector<1x16xf32>
    %35 = arith.addf %28, %34 : vector<1x16xf32>
    %c0_33 = arith.constant 0 : index
    %c2_34 = arith.constant 2 : index
    %c0_35 = arith.constant 0 : index
    %c0_36 = arith.constant 0 : index
    %36 = vector.load %arg2[%c0_33, %c2_34, %c0_35, %c0_36] : memref<1x3x16x16xf32, #tpu.memory_space<vmem>>, vector<1x1x16x16xf32>
    %37 = vector.shape_cast %36 : vector<1x1x16x16xf32> to vector<16x16xf32>
    %cst_37 = arith.constant dense<0.000000e+00> : vector<32x16xf32>
    %38 = tpu.matmul %1, %37, %cst_37 {dimension_numbers = #tpu.dot_dimension_numbers<[1], [1], [0], [0], [0, 0, 1, 0], [], []>} : vector<32x16xf32>, vector<16x16xf32>, vector<32x16xf32> -> vector<32x16xf32>
    %c5 = arith.constant 5 : index
    %c0_38 = arith.constant 0 : index
    %c0_39 = arith.constant 0 : index
    %39 = vector.load %arg3[%c5, %c0_38, %c0_39] : memref<7x1x32xf32, #tpu.memory_space<vmem>>, vector<1x1x32xf32>
    %40 = vector.shape_cast %39 : vector<1x1x32xf32> to vector<1x32xf32>
    %cst_40 = arith.constant dense<0.000000e+00> : vector<1x16xf32>
    %41 = tpu.matmul %40, %38, %cst_40 {dimension_numbers = #tpu.dot_dimension_numbers<[1], [0], [0], [1], [0, 0, 1, 1], [], []>} : vector<1x32xf32>, vector<32x16xf32>, vector<1x16xf32> -> vector<1x16xf32>
    %42 = arith.addf %35, %41 : vector<1x16xf32>
    %cst_41 = arith.constant dense<0.000000e+00> : vector<32x16xf32>
    %43 = tpu.matmul %38, %37, %cst_41 {dimension_numbers = #tpu.dot_dimension_numbers<[1], [1], [0], [0], [0, 0, 1, 0], [], []>} : vector<32x16xf32>, vector<16x16xf32>, vector<32x16xf32> -> vector<32x16xf32>
    %cst_42 = arith.constant 0.000000e+00 : f32
    %44 = vector.broadcast %cst_42 : f32 to vector<32x16xf32>
    %45 = arith.maximumf %43, %44 : vector<32x16xf32>
    %c6 = arith.constant 6 : index
    %c0_43 = arith.constant 0 : index
    %c0_44 = arith.constant 0 : index
    %46 = vector.load %arg3[%c6, %c0_43, %c0_44] : memref<7x1x32xf32, #tpu.memory_space<vmem>>, vector<1x1x32xf32>
    %47 = vector.shape_cast %46 : vector<1x1x32xf32> to vector<1x32xf32>
    %cst_45 = arith.constant dense<0.000000e+00> : vector<1x16xf32>
    %48 = tpu.matmul %47, %45, %cst_45 {dimension_numbers = #tpu.dot_dimension_numbers<[1], [0], [0], [1], [0, 0, 1, 1], [], []>} : vector<1x32xf32>, vector<32x16xf32>, vector<1x16xf32> -> vector<1x16xf32>
    %49 = arith.addf %42, %48 : vector<1x16xf32>
    %50 = tpu.iota {dimensions = array<i32: 0>} : vector<16x16xi32>
    %51 = tpu.iota {dimensions = array<i32: 1>} : vector<16x16xi32>
    %52 = arith.cmpi eq, %50, %51 : vector<16x16xi32>
    %53 = arith.extui %52 : vector<16x16xi1> to vector<16x16xi32>
    %54 = arith.sitofp %53 : vector<16x16xi32> to vector<16x16xf32>
    %cst_46 = arith.constant dense<0.000000e+00> : vector<16x1xf32>
    %55 = tpu.matmul %54, %49, %cst_46 {dimension_numbers = #tpu.dot_dimension_numbers<[1], [1], [0], [0], [0, 0, 1, 0], [], []>} : vector<16x16xf32>, vector<1x16xf32>, vector<16x1xf32> -> vector<16x1xf32>
    %56 = vector.broadcast %55 : vector<16x1xf32> to vector<16x16xf32>
    %57 = vector.broadcast %49 : vector<1x16xf32> to vector<16x16xf32>
    %58 = arith.cmpf ogt, %56, %57 : vector<16x16xf32>
    %59 = vector.broadcast %55 : vector<16x1xf32> to vector<16x16xf32>
    %60 = vector.broadcast %49 : vector<1x16xf32> to vector<16x16xf32>
    %61 = arith.cmpf oeq, %59, %60 : vector<16x16xf32>
    %62 = arith.cmpi slt, %50, %51 : vector<16x16xi32>
    %63 = arith.andi %61, %62 : vector<16x16xi1>
    %64 = arith.ori %58, %63 : vector<16x16xi1>
    %65 = arith.extui %64 : vector<16x16xi1> to vector<16x16xi32>
    %66 = arith.sitofp %65 : vector<16x16xi32> to vector<16x16xf32>
    %cst_47 = arith.constant dense<0.000000e+00> : vector<16xf32>
    %67 = vector.multi_reduction <add>, %66, %cst_47 [0] : vector<16x16xf32> to vector<16xf32>
    %68 = vector.shape_cast %67 : vector<16xf32> to vector<1x16xf32>
    %69 = tpu.iota {dimensions = array<i32: 0>} : vector<8x16xi32>
    %70 = arith.sitofp %69 : vector<8x16xi32> to vector<8x16xf32>
    %71 = vector.broadcast %68 : vector<1x16xf32> to vector<8x16xf32>
    %72 = arith.cmpf oeq, %71, %70 : vector<8x16xf32>
    %73 = arith.extui %72 : vector<8x16xi1> to vector<8x16xi32>
    %74 = arith.sitofp %73 : vector<8x16xi32> to vector<8x16xf32>
    %cst_48 = arith.constant dense<0.000000e+00> : vector<32x8xf32>
    %75 = tpu.matmul %1, %74, %cst_48 {dimension_numbers = #tpu.dot_dimension_numbers<[1], [1], [0], [0], [0, 0, 1, 0], [], []>} : vector<32x16xf32>, vector<8x16xf32>, vector<32x8xf32> -> vector<32x8xf32>
    %cst_49 = arith.constant dense<0.000000e+00> : vector<1x8xf32>
    %76 = tpu.matmul %49, %74, %cst_49 {dimension_numbers = #tpu.dot_dimension_numbers<[1], [1], [0], [0], [0, 0, 1, 0], [], []>} : vector<1x16xf32>, vector<8x16xf32>, vector<1x8xf32> -> vector<1x8xf32>
    %77 = math.tanh %76 : vector<1x8xf32>
    %78 = vector.broadcast %77 : vector<1x8xf32> to vector<32x8xf32>
    %79 = arith.mulf %75, %78 : vector<32x8xf32>
    %c0_50 = arith.constant 0 : index
    %c0_51 = arith.constant 0 : index
    %c0_52 = arith.constant 0 : index
    %80 = vector.load %arg5[%c0_50, %c0_51, %c0_52] : memref<1x32x8xf32, #tpu.memory_space<vmem>>, vector<1x32x8xf32>
    %81 = vector.shape_cast %80 : vector<1x32x8xf32> to vector<32x8xf32>
    %82 = vector.shape_cast %79 : vector<32x8xf32> to vector<1x32x8xf32>
    tpu.vector_store %arg5[%c0_50, %c0_51, %c0_52], %82 {strides = array<i32>} : memref<1x32x8xf32, #tpu.memory_space<vmem>>, vector<1x32x8xf32>,
    return
  }
  func.func @transform_0(%arg0: i32) -> (i32, i32, i32) {
    %c0_i32 = arith.constant 0 : i32
    %c0_i32_0 = arith.constant 0 : i32
    %c0_i32_1 = arith.constant 0 : i32
    return %arg0, %c0_i32, %c0_i32_0 : i32, i32, i32
  }
  func.func @transform_1(%arg0: i32) -> (i32, i32, i32, i32) {
    %c0_i32 = arith.constant 0 : i32
    %c0_i32_0 = arith.constant 0 : i32
    %c0_i32_1 = arith.constant 0 : i32
    %c0_i32_2 = arith.constant 0 : i32
    return %arg0, %c0_i32, %c0_i32_0, %c0_i32_1 : i32, i32, i32, i32
  }
  func.func @transform_2(%arg0: i32) -> (i32, i32, i32) {
    %c0_i32 = arith.constant 0 : i32
    %c0_i32_0 = arith.constant 0 : i32
    %c0_i32_1 = arith.constant 0 : i32
    %c0_i32_2 = arith.constant 0 : i32
    return %c0_i32, %c0_i32_0, %c0_i32_1 : i32, i32, i32
  }
  func.func @transform_3(%arg0: i32) -> (i32, i32) {
    %c0_i32 = arith.constant 0 : i32
    %c0_i32_0 = arith.constant 0 : i32
    %c0_i32_1 = arith.constant 0 : i32
    return %c0_i32, %c0_i32_0 : i32, i32
  }
  func.func @transform_4(%arg0: i32) -> (i32, i32, i32) {
    %c0_i32 = arith.constant 0 : i32
    %c0_i32_0 = arith.constant 0 : i32
    %c0_i32_1 = arith.constant 0 : i32
    return %arg0, %c0_i32, %c0_i32_0 : i32, i32, i32
  }
}

</mosaic_0001>

<bundles_post_ra>
// kernel: tpu_custom_call.1
= control target key start
LH: loop header
LB: loop body
LE: loop exit
PB: predicated region body
PF: predicated region fallthrough
CT: control target
= control target key end

     0   :  { %s1171_s0 = inlined_call_operand.vmem [shape: f32[2,32,16], index: 0, kind: input, shape index: {}]   ;;  %s1172_s1 = inlined_call_operand.vmem [shape: f32[2,3,16,16], index: 1, kind: input, shape index: {}]   ;;  %s1173_s2 = inlined_call_operand.hbm [shape: f32[7,1,32], index: 2, kind: input, shape index: {}]   ;;  %s1174_s3 = inlined_call_operand.<no memory space> [shape: f32[1,1], index: 3, kind: input, shape index: {}]   ;;  %s1175_s4 = inlined_call_operand.vmem [shape: f32[2,32,8], index: 4, kind: output, shape index: {}]  }
   0x1   :  { %9 = sst [smem:[#allocation2]] %s1174_s3 }
   0x2   :  { %10 = vsyncpa [#allocation4], 0  ;;  %s1050_s17 = smov 0  }
   0x3 LB: > { %s152_s20 = sshll.u32 %s1173_s2, 4  ;;  %s876_s21 = sadd.s32 4294967295, %s1016_s17   ;;  %s1016_s17 = sphi %s1050_s17, %s16_s17   ;;  %s153_s20 = int_to_ptr.hbm [resolvable:$true] %s152_s20 }
   0x4   : > { %p878_p0 = scmp.ge.s32.totalorder %s1016_s17, 1  ;;  %p141_p1 = scmp.lt.s32.totalorder %s1016_s17, 3 }
   0x5   : > { %p960_p2 = scmp.eq.s32.totalorder %s876_s21, 0  ;;  %s1018_s3 = smov [#allocation3]  }
   0x6   : > { %p142_p3 = pnand %p878_p0, %p141_p1  ;;  %s154_s22 = sshll.u32 %s1018_s3, 4  ;;  %s155_s22 = int_to_ptr.vmem [resolvable:$true] %s154_s22 }
   0x7   : > { %s1019_s23 = smov 16   ;;  %s1020_s24 = smov 1  }
   0x8   : > { %p956_p4 = pneg %p142_p3  ;;  %189 = sbr.rel (%p142_p3) target bundleno = 1065 (0x429), region = 36 }
   0xa   : > { %p957_p5 = pnand %p960_p2, %p956_p4 }
   0xc   : > { %959 = dma.hbm_to_vmem [thread:$0]  (!%p957_p5), %s153_s20, 112, %s155_s22, [#allocation4], %s1019_s23, %s1019_s23, %s1020_s24  }
   0xd   : > { %1011 = dma.done.wait (%p960_p2), [#allocation4], 112  }
   0xe   : > { %1013 = vsyncadd (%p960_p2), [#allocation4], 4294967184  ;;  %p221_p6 = scmp.lt.s32.totalorder %s876_s21, 1  ;;  %vm269_vm0 = vcmask 130048   ;;  %v241_v5 = vld [vmem:[#allocation3] sm:$0x1] }
   0xf   : > { %vm243_vm1 = vcmask 261120   ;;  %v318_v12 = vld [vmem:[#allocation3 + $0x1] sm:$0x1]  ;;  %s240_s7 = sld [smem:[#allocation2]]  ;;  %v389_v28 = vld [vmem:[#allocation3 + $0x2] sm:$0x1] }
  0x10   : > { %s1177_s21 = smov (!%p221_p6, %s876_s21), 1  ;;  %v453_v34 = vld [vmem:[#allocation3 + $0x3] sm:$0x1]  ;;  %v524_v51 = vld [vmem:[#allocation3 + $0x4] sm:$0x1]  ;;  %vm792_vm15 = vcmask 64512  }
  0x11   : > { %s949_s25 = sshll.u32 %s1177_s21, 5  ;;  %s951_s26 = smul.u32 48, %s1177_s21  ;;  %v588_v52 = vld [vmem:[#allocation3 + $0x5] sm:$0x1]  ;;  %v659_v61 = vld [vmem:[#allocation3 + $0x6] sm:$0x1] }
  0x12   : > { %s225_s29 = scalar_lea.vmem %s1171_s0, %s949_s25  ;;  %s235_s10 = scalar_lea.vmem %s1175_s4, %s949_s25 }
  0x13   : > { %s1073_s6 = scalar_lea.vmem %s1172_s1, %s951_s26  ;;  %v1075_v0 = vld [vmem:[%s225_s29 + $0x18] sm:$0xff]  ;;  %v1077_v1 = vld [vmem:[%s225_s29 + $0x10] sm:$0xff]  ;;  %v1081_v3 = vld [vmem:[%s225_s29 + $0x8] sm:$0xff] }
  0x14   : > { %259 = vmatpush.msra.mxu1 %v1075_v0  ;;  %v268_v2 = vld [vmem:[%s1073_s6 + $0x8] sm:$0xff]  ;;  %v1085_v4 = vld [vmem:[%s225_s29] sm:$0xff]  ;;  %v904_v13 = vld [vmem:[%s1073_s6 + $0x18] sm:$0xff] }
  0x15   : > { %896 = vmatpush.xpose.msk.msra.mxu3 %vm269_vm0, %v268_v2  ;;  %v267_v6 = vld [vmem:[%s1073_s6] sm:$0xff]  ;;  %v903_v14 = vld [vmem:[%s1073_s6 + $0x10] sm:$0xff]  ;;  %v920_v16 = vld [vmem:[%s1073_s6 + $0x28] sm:$0xff]  ;;  %v242_v22 = vstv %s240_s7 }
  0x16   : > { %260 = vmatpush.msra.mxu1 %v1077_v1  ;;  %v919_v17 = vld [vmem:[%s1073_s6 + $0x20] sm:$0xff] }
  0x18   : > { %261 = vmatpush.msra.mxu1 %v1081_v3 }
  0x19   : > { %897 = vmatpush.xpose.msk.msra.mxu3 %vm269_vm0, %v267_v6 }
  0x1a   : > { %262 = vmatpush.msra.mxu1 %v1085_v4 }
  0x1b   : > { %888 = vmatmul.msk.f32.vlgmr.msra.gmra.mxu1 %vm243_vm1, %v241_v5 }
  0x1c   : > { %889 = vmatpush.xpose.msk.msrb.mxu1 %vm269_vm0, %v268_v2  ;;  %v684_v2 = vlaneseq }
  0x1e   : > { %v688_v5 = vand.u32 127, %v684_v2 }
  0x20   : > { %890 = vmatpush.xpose.msk.msrb.mxu1 %vm269_vm0, %v267_v6 }
  0x23   : > { %891 = vmatmul.msk.f32.vlgmr.msrb.gmra.mxu1 %vm269_vm0, %v1085_v4 }
  0x2b   : > { %892 = vmatmul.msk.f32.gmra.mxu1 %vm269_vm0, %v1081_v3 }
  0x33   : > { %893 = vmatmul.msk.f32.gmra.mxu1 %vm269_vm0, %v1077_v1 }
  0x3b   : > { %894 = vmatmul.msk.f32.gmra.mxu1 %vm269_vm0, %v1075_v0 }
  0x98   : > { %v264_v7 = vpop.f32.mrf.mxu1 }
  0x99   : > { %v265_v25 = vadd.f32 %v264_v7, %v242_v22  ;;  %v685_v7 = vshrl.u32 %v684_v2, 7 }
  0x9b   : > { %vm689_vm2 = vcmp.eq.s32.totalorder %v685_v7, %v688_v5  ;;  %vm708_vm4 = vcmp.lt.s32.totalorder %v685_v7, %v688_v5 }
  0xa0   : > { %v305_v8 = vpop.f32.mrf.mxu1 }
  0xa1   : > { %898 = vmatmul.msk.f32.vlgmr.msra.gmra.mxu3 %vm269_vm0, %v305_v8 }
  0xa8   : > { %v308_v9 = vpop.f32.mrf.mxu1 }
  0xa9   : > { %899 = vmatmul.msk.f32.gmra.mxu3 %vm269_vm0, %v308_v9 }
  0xb0   : > { %v311_v10 = vpop.f32.mrf.mxu1 }
  0xb1   : > { %900 = vmatmul.msk.f32.gmra.mxu3 %vm269_vm0, %v311_v10 }
  0xb8   : > { %v314_v11 = vpop.f32.mrf.mxu1 }
  0xb9   : > { %334 = vmatpush.msra.mxu2 %v314_v11  ;;  %901 = vmatmul.msk.f32.gmra.mxu3 %vm269_vm0, %v314_v11  ;;  %v686_v11 = vadd.s32 8, %v685_v7 }
  0xbb   : > { %335 = vmatpush.msra.mxu2 %v311_v10  ;;  %vm690_vm3 = vcmp.eq.s32.totalorder %v686_v11, %v688_v5  ;;  %vm709_vm9 = vcmp.lt.s32.totalorder %v686_v11, %v688_v5 }
  0xbd   : > { %336 = vmatpush.msra.mxu2 %v308_v9 }
  0xbf   : > { %337 = vmatpush.msra.mxu2 %v305_v8 }
  0xc0   : > { %895 = vmatmul.msk.f32.vlgmr.msra.gmra.mxu2 %vm243_vm1, %v318_v12  ;;  %v1021_v12 = vmov 0.0  }
  0xc1   : > { %905 = vmatpush.xpose.msk.msrb.mxu2 %vm269_vm0, %v904_v13 }
  0xc5   : > { %906 = vmatpush.xpose.msk.msrb.mxu2 %vm269_vm0, %v903_v14 }
  0xc8   : > { %907 = vmatmul.msk.f32.vlgmr.msrb.gmra.mxu2 %vm269_vm0, %v1085_v4 }
  0xc9   : > { %928 = vmatpush.xpose.msk.msra.mxu2 %vm269_vm0, %v920_v16 }
  0xcd   : > { %929 = vmatpush.xpose.msk.msra.mxu2 %vm269_vm0, %v919_v17 }
  0xd0   : > { %908 = vmatmul.msk.f32.gmra.mxu2 %vm269_vm0, %v1081_v3 }
  0xd8   : > { %909 = vmatmul.msk.f32.gmra.mxu2 %vm269_vm0, %v1077_v1 }
  0xe0   : > { %910 = vmatmul.msk.f32.gmra.mxu2 %vm269_vm0, %v1075_v0 }
 0x124   : > { %v372_v15 = vpop.f32.mrf.mxu3 }
 0x125   : > { %v384_v26 = vmax.f32 %v372_v15, 0.0 }
 0x12c   : > { %v375_v18 = vpop.f32.mrf.mxu3 }
 0x12d   : > { %v385_v24 = vmax.f32 %v375_v18, 0.0 }
 0x134   : > { %v378_v19 = vpop.f32.mrf.mxu3 }
 0x135   : > { %v386_v23 = vmax.f32 %v378_v19, 0.0 }
 0x13c   : > { %v381_v20 = vpop.f32.mrf.mxu3 }
 0x13d   : > { %v387_v21 = vmax.f32 %v381_v20, 0.0 }
 0x13f   : > { %405 = vmatpush.msrb.mxu3 %v387_v21 }
 0x141   : > { %406 = vmatpush.msrb.mxu3 %v386_v23 }
 0x143   : > { %v339_v27 = vpop.f32.mrf.mxu2  ;;  %407 = vmatpush.msrb.mxu3 %v385_v24 }
 0x144   : > { %v342_v29 = vadd.f32 %v339_v27, %v265_v25 }
 0x145   : > { %408 = vmatpush.msrb.mxu3 %v384_v26 }
 0x146   : > { %902 = vmatmul.msk.f32.vlgmr.msrb.gmra.mxu3 %vm243_vm1, %v389_v28 }
 0x147   : > { %921 = vmatpush.xpose.msk.msra.mxu3 %vm269_vm0, %v920_v16 }
 0x14b   : > { %v440_v30 = vpop.f32.mrf.mxu2  ;;  %922 = vmatpush.xpose.msk.msra.mxu3 %vm269_vm0, %v919_v17  ;;  %v936_v17 = vsel %vm690_vm3, 1.0, %v1021_v12 }
 0x14e   : > { %923 = vmatmul.msk.f32.vlgmr.msra.gmra.mxu3 %vm269_vm0, %v1085_v4 }
 0x153   : > { %v443_v31 = vpop.f32.mrf.mxu2 }
 0x156   : > { %924 = vmatmul.msk.f32.gmra.mxu3 %vm269_vm0, %v1081_v3 }
 0x15b   : > { %v446_v32 = vpop.f32.mrf.mxu2 }
 0x15e   : > { %925 = vmatmul.msk.f32.gmra.mxu3 %vm269_vm0, %v1077_v1 }
 0x163   : > { %v449_v33 = vpop.f32.mrf.mxu2 }
 0x164   : > { %469 = vmatpush.msra.mxu0 %v449_v33 }
 0x166   : > { %470 = vmatpush.msra.mxu0 %v446_v32  ;;  %926 = vmatmul.msk.f32.gmra.mxu3 %vm269_vm0, %v1075_v0 }
 0x168   : > { %471 = vmatpush.msra.mxu0 %v443_v31 }
 0x16a   : > { %472 = vmatpush.msra.mxu0 %v440_v30 }
 0x16b   : > { %911 = vmatmul.msk.f32.vlgmr.msra.gmra.mxu0 %vm243_vm1, %v453_v34 }
 0x16c   : > { %912 = vmatpush.xpose.msk.msrb.mxu0 %vm269_vm0, %v904_v13  ;;  %v935_v13 = vsel %vm689_vm2, 1.0, %v1021_v12 }
 0x170   : > { %913 = vmatpush.xpose.msk.msrb.mxu0 %vm269_vm0, %v903_v14 }
 0x173   : > { %914 = vmatmul.msk.f32.vlgmr.msrb.gmra.mxu0 %vm269_vm0, %v440_v30 }
 0x17b   : > { %915 = vmatmul.msk.f32.gmra.mxu0 %vm269_vm0, %v443_v31 }
 0x183   : > { %916 = vmatmul.msk.f32.gmra.mxu0 %vm269_vm0, %v446_v32  ;;  %v727_v32 = vcvt.s32.f32 %v685_v7 }
 0x18b   : > { %917 = vmatmul.msk.f32.gmra.mxu0 %vm269_vm0, %v449_v33 }
 0x1c9   : > { %v410_v35 = vpop.f32.mrf.mxu3 }
 0x1ca   : > { %v413_v36 = vadd.f32 %v410_v35, %v342_v29 }
 0x1d1   : > { %v575_v37 = vpop.f32.mrf.mxu3 }
 0x1d2   : > { %930 = vmatmul.msk.f32.vlgmr.msra.gmra.mxu2 %vm269_vm0, %v575_v37 }
 0x1d9   : > { %v578_v38 = vpop.f32.mrf.mxu3 }
 0x1da   : > { %931 = vmatmul.msk.f32.gmra.mxu2 %vm269_vm0, %v578_v38 }
 0x1e1   : > { %v581_v39 = vpop.f32.mrf.mxu3 }
 0x1e2   : > { %932 = vmatmul.msk.f32.gmra.mxu2 %vm269_vm0, %v581_v39 }
 0x1e8   : > { %v474_v40 = vpop.f32.mrf.mxu0 }
 0x1e9   : > { %v477_v41 = vadd.f32 %v474_v40, %v413_v36  ;;  %v584_v42 = vpop.f32.mrf.mxu3 }
 0x1ea   : > { %933 = vmatmul.msk.f32.gmra.mxu2 %vm269_vm0, %v584_v42 }
 0x1f0   : > { %v507_v43 = vpop.f32.mrf.mxu0 }
 0x1f1   : > { %v519_v50 = vmax.f32 %v507_v43, 0.0 }
 0x1f8   : > { %v510_v44 = vpop.f32.mrf.mxu0 }
 0x1f9   : > { %v520_v49 = vmax.f32 %v510_v44, 0.0 }
 0x200   : > { %v513_v45 = vpop.f32.mrf.mxu0 }
 0x201   : > { %v521_v47 = vmax.f32 %v513_v45, 0.0 }
 0x208   : > { %v516_v46 = vpop.f32.mrf.mxu0 }
 0x209   : > { %v522_v48 = vmax.f32 %v516_v46, 0.0 }
 0x20b   : > { %540 = vmatpush.msra.mxu1 %v522_v48 }
 0x20d   : > { %541 = vmatpush.msra.mxu1 %v521_v47 }
 0x20f   : > { %542 = vmatpush.msra.mxu1 %v520_v49 }
 0x211   : > { %543 = vmatpush.msra.mxu1 %v519_v50 }
 0x212   : > { %918 = vmatmul.msk.f32.vlgmr.msra.gmra.mxu1 %vm243_vm1, %v524_v51 }
 0x213   : > { %604 = vmatpush.msrb.mxu1 %v584_v42 }
 0x215   : > { %605 = vmatpush.msrb.mxu1 %v581_v39 }
 0x217   : > { %606 = vmatpush.msrb.mxu1 %v578_v38 }
 0x219   : > { %607 = vmatpush.msrb.mxu1 %v575_v37 }
 0x21a   : > { %927 = vmatmul.msk.f32.vlgmr.msrb.gmra.mxu1 %vm243_vm1, %v588_v52 }
 0x255   : > { %v642_v53 = vpop.f32.mrf.mxu2 }
 0x256   : > { %v654_v60 = vmax.f32 %v642_v53, 0.0 }
 0x25d   : > { %v645_v54 = vpop.f32.mrf.mxu2 }
 0x25e   : > { %v655_v59 = vmax.f32 %v645_v54, 0.0 }
 0x265   : > { %v648_v55 = vpop.f32.mrf.mxu2 }
 0x266   : > { %v656_v58 = vmax.f32 %v648_v55, 0.0 }
 0x26d   : > { %v651_v56 = vpop.f32.mrf.mxu2 }
 0x26e   : > { %v657_v57 = vmax.f32 %v651_v56, 0.0 }
 0x270   : > { %675 = vmatpush.msra.mxu1 %v657_v57 }
 0x272   : > { %676 = vmatpush.msra.mxu1 %v656_v58 }
 0x274   : > { %677 = vmatpush.msra.mxu1 %v655_v59 }
 0x276   : > { %678 = vmatpush.msra.mxu1 %v654_v60 }
 0x277   : > { %934 = vmatmul.msk.f32.vlgmr.msra.gmra.mxu1 %vm243_vm1, %v659_v61 }
 0x28f   : > { %v545_v62 = vpop.f32.mrf.mxu1 }
 0x290   : > { %v548_v6 = vadd.f32 %v545_v62, %v477_v41 }
 0x297   : > { %v609_v63 = vpop.f32.mrf.mxu1 }
 0x298   : > { %v612_v8 = vadd.f32 %v609_v63, %v548_v6 }
 0x2f4   : > { %v680_v9 = vpop.f32.mrf.mxu1 }
 0x2f5   : > { %v683_v10 = vadd.f32 %v680_v9, %v612_v8 }
 0x2f7   : > { %v695_v14 = vperm.slane %v683_v10, 0 }
 0x2f9   : > { %v696_v15 = vmul.f32 %v935_v13, %v695_v14  ;;  %v697_v18 = vmul.f32 %v936_v17, %v695_v14 }
 0x2fb   : > { %v698_v16 = vsel %vm269_vm0, %v696_v15, 0.0  ;;  %v701_v19 = vsel %vm269_vm0, %v697_v18, 0.0 }
 0x2fc   : > { %699 = vadd.xlane.f32.xlu0 %v698_v16 }
 0x304   : > { %702 = vadd.xlane.f32.xlu0 %v701_v19 }
 0x36f   : > { %v700_v20 = vpop.xlane.xlu0 %699 }
 0x370   : > { %vm706_vm5 = vcmp.eq.f32.partialorder %v700_v20, %v695_v14  ;;  %vm704_vm6 = vcmp.gt.f32.partialorder %v700_v20, %v695_v14 }
 0x371   : > { %vm710_vm7 = vmand %vm706_vm5, %vm708_vm4 }
 0x372   : > { %vm712_vm8 = vmor %vm704_vm6, %vm710_vm7 }
 0x373   : > { %v937_v22 = vsel %vm712_vm8, 1.0, %v1021_v12 }
 0x374   : > { %v718_v24 = vsel %vm269_vm0, %v937_v22, 0.0 }
 0x377   : > { %v703_v21 = vpop.xlane.xlu0 %702 }
 0x378   : > { %vm705_vm10 = vcmp.gt.f32.partialorder %v703_v21, %v695_v14  ;;  %vm707_vm11 = vcmp.eq.f32.partialorder %v703_v21, %v695_v14 }
 0x379   : > { %vm711_vm12 = vmand %vm707_vm11, %vm709_vm9 }
 0x37a   : > { %vm713_vm13 = vmor %vm705_vm10, %vm711_vm12 }
 0x37b   : > { %v938_v23 = vsel %vm713_vm13, 1.0, %v1021_v12 }
 0x37c   : > { %v719_v25 = vsel %vm269_vm0, %v938_v23, 0.0 }
 0x37d   : > { %v720_v26 = vadd.f32 %v719_v25, %v718_v24 }
 0x37f   : > { %v721_v27 = vrot.slane %v720_v26, 4 }
 0x381   : > { %v722_v28 = vadd.f32 %v721_v27, %v720_v26 }
 0x383   : > { %v723_v29 = vrot.slane %v722_v28, 2 }
 0x385   : > { %v724_v30 = vadd.f32 %v723_v29, %v722_v28 }
 0x387   : > { %v725_v31 = vrot.slane %v724_v30, 1 }
 0x389   : > { %v726_v33 = vadd.f32 %v725_v31, %v724_v30 }
 0x38b   : > { %vm728_vm14 = vcmp.eq.f32.partialorder %v726_v33, %v727_v32 }
 0x38c   : > { %v939_v34 = vsel %vm728_vm14, 1.0, %v1021_v12 }
 0x38d   : > { %940 = vmatpush.xpose.msk.msra.mxu0 %vm269_vm0, %v939_v34  ;;  %945 = vmatpush.xpose.msk.msrb.mxu1 %vm269_vm0, %v939_v34 }
 0x390   : > { %941 = vmatmul.msk.f32.vlgmr.msra.gmra.mxu0 %vm269_vm0, %v1085_v4  ;;  %946 = vmatmul.msk.f32.vlgmr.msrb.gmra.mxu1 %vm269_vm0, %v683_v10 }
 0x398   : > { %942 = vmatmul.msk.f32.gmra.mxu0 %vm269_vm0, %v1081_v3 }
 0x3a0   : > { %943 = vmatmul.msk.f32.gmra.mxu0 %vm269_vm0, %v1077_v1 }
 0x3a8   : > { %944 = vmatmul.msk.f32.gmra.mxu0 %vm269_vm0, %v1075_v0 }
 0x40d   : > { %v751_v35 = vpop.f32.mrf.mxu0  ;;  %v783_v36 = vpop.f32.mrf.mxu1 }
 0x40e   : > { %974 = vtanh.f32 %v783_v36 }
 0x414   : > { %v975_v37 = vpop.eup %974 }
 0x415   : > { %v787_v38 = vperm.slane %v975_v37, 0  ;;  %v754_v39 = vpop.f32.mrf.mxu0 }
 0x417   : > { %v788_v4 = vmul.f32 %v787_v38, %v751_v35  ;;  %v789_v3 = vmul.f32 %v787_v38, %v754_v39 }
 0x419   : > { %793 = vst.msk [vmem:[%s235_s10] sm:$0xff] %vm792_vm15, %v788_v4 }
 0x41a   : > { %794 = vst.msk [vmem:[%s235_s10 + $0x8] sm:$0xff] %vm792_vm15, %v789_v3 }
 0x41d   : > { %v757_v1 = vpop.f32.mrf.mxu0 }
 0x41e   : > { %v790_v40 = vmul.f32 %v787_v38, %v757_v1 }
 0x420   : > { %795 = vst.msk [vmem:[%s235_s10 + $0x10] sm:$0xff] %vm792_vm15, %v790_v40 }
 0x425   : > { %v760_v0 = vpop.f32.mrf.mxu0 }
 0x426   : > { %v791_v41 = vmul.f32 %v787_v38, %v760_v0 }
 0x428   : > { %796 = vst.msk [vmem:[%s235_s10 + $0x18] sm:$0xff] %vm792_vm15, %v791_v41 }
 0x429 PF: > { %s16_s17 = sadd.s32 1, %s1016_s17  }
 0x42a   : > { %p13_p7 = scmp.ge.s32.totalorder %s16_s17, 4  }
 0x42c   :  { %15 = sbr.rel (!%p13_p7) target bundleno = 3 (0x3), region = 82 }
 0x431   :  { %818 = vsyncpa [#allocation4], 1 }
 0x432   :  { %820 = vsyncpa [#allocation4 + $0x1], 1 }

</bundles_post_ra>
